<compile_context>
chip_gen: v6e
topology: v6e:2x2x1
jax: 0.10.0
libtpu: 0.0.40
codegen_flags: <defaults>
</compile_context>

<pallas_src>
import jax
import jax.numpy as jnp
from jax.experimental import pallas as pl
from jax.experimental.pallas import tpu as pltpu

LANES = 128
SUBLANES = 8
NUM_CORES = 2                  # megacore split (v7x); sequential on 1-TC chips
TARGET_BLOCK_BYTES = 1 << 20   # ~1 MiB per input block: near roofline, fits v5e/v7x VMEM


def _make_mse_sum(rows, tile_r, inner, n_tiles, dtype):
    """pallas_call producing per-core (8,128) partial sums of (p - g)^2."""
    need_clamp = NUM_CORES * inner > n_tiles          # core 1 may re-read last block
    need_mask = need_clamp or (rows % tile_r != 0)    # partial last block or re-read

    def kernel(p_ref, g_ref, out_ref):
        i = pl.program_id(1)

        @pl.when(i == 0)
        def _():
            out_ref[...] = jnp.zeros_like(out_ref)

        d = p_ref[...].astype(jnp.float32) - g_ref[...].astype(jnp.float32)
        if need_mask:
            c = pl.program_id(0)
            tile_idx = c * pl.num_programs(1) + i
            row_ids = tile_idx * tile_r + jax.lax.broadcasted_iota(
                jnp.int32, (tile_r, 1), 0)
            d = jnp.where(row_ids < rows, d, 0.0)
        dsq = d * d
        # (tile_r,128) -> (tile_r//8, 8, 128); sum over leading dim = VPU-only adds.
        partial = dsq.reshape(tile_r // SUBLANES, SUBLANES, LANES).sum(axis=0)
        out_ref[...] += partial[None]

    if need_clamp:
        def in_map(c, i):
            return (jnp.minimum(c * inner + i, n_tiles - 1), 0)
    else:
        def in_map(c, i):
            return (c * inner + i, 0)

    n_elems = rows * LANES
    itemsize = jnp.dtype(dtype).itemsize
    return pl.pallas_call(
        kernel,
        out_shape=jax.ShapeDtypeStruct((NUM_CORES, SUBLANES, LANES), jnp.float32),
        grid=(NUM_CORES, inner),
        in_specs=[
            pl.BlockSpec((tile_r, LANES), in_map),
            pl.BlockSpec((tile_r, LANES), in_map),
        ],
        out_specs=pl.BlockSpec((1, SUBLANES, LANES), lambda c, i: (c, 0, 0)),
        compiler_params=pltpu.CompilerParams(
            dimension_semantics=("parallel", "arbitrary")),
        cost_estimate=pl.CostEstimate(
            flops=3 * n_elems,
            transcendentals=0,
            bytes_accessed=2 * n_elems * itemsize
            + NUM_CORES * SUBLANES * LANES * 4),
    )


def mse_loss_pallas(rgb_pred, rgb_gt):
    assert rgb_pred.shape == rgb_gt.shape, (rgb_pred.shape, rgb_gt.shape)
    n_elems = rgb_pred.size
    if n_elems == 0:
        return {"loss": jnp.float32(0.0)}

    p = rgb_pred.reshape(-1)
    g = rgb_gt.reshape(-1)

    chunk = SUBLANES * LANES                 # 1024 -> kernel rows always multiple of 8
    main = (n_elems // chunk) * chunk
    rows = main // LANES

    # Tiny (<1024-element) tail summed in plain JAX (option (b) from the review).
    if main < n_elems:
        dt = p[main:].astype(jnp.float32) - g[main:].astype(jnp.float32)
        tail_sum = jnp.sum(dt * dt)
    else:
        tail_sum = jnp.float32(0.0)

    if rows == 0:
        total = tail_sum
    else:
        # Zero-copy reshape when n_elems is a multiple of 1024 (no pad, no cast).
        p2 = p[:main].reshape(rows, LANES)
        g2 = g[:main].reshape(rows, LANES)

        itemsize = jnp.dtype(p2.dtype).itemsize
        tile_r_max = max(
            SUBLANES,
            (TARGET_BLOCK_BYTES // (LANES * itemsize)) // SUBLANES * SUBLANES)
        tile_r = min(tile_r_max, rows)       # both multiples of 8
        n_tiles = pl.cdiv(rows, tile_r)
        inner = pl.cdiv(n_tiles, NUM_CORES)

        partials = _make_mse_sum(rows, tile_r, inner, n_tiles, p2.dtype)(p2, g2)
        total = jnp.sum(partials) + tail_sum

    loss = total / jnp.float32(n_elems)
    return {"loss": loss}


class LossEvalPallas:
    """JAX/Pallas equivalent of localTensoRF Loss_Eval (no parameters)."""

    def __call__(self, rgb_pred, rgb_gt):
        return mse_loss_pallas(rgb_pred, rgb_gt)


if __name__ == "__main__":
    key = jax.random.PRNGKey(0)
    model = LossEvalPallas()
    loss_fn = jax.jit(lambda a, b: model(a, b))

    # shapes exercise: full-kernel path, kernel+JAX-tail path, pure-tail path
    shapes = [(2, 4, 16, 16), (2, 3, 17, 13), (5, 7, 3)]
    for idx, shp in enumerate(shapes):
        k1, k2 = jax.random.split(jax.random.fold_in(key, idx))
        rgb_pred = jax.random.uniform(k1, shp, dtype=jnp.float32)
        rgb_gt = jax.random.uniform(k2, shp, dtype=jnp.float32)

        out = loss_fn(rgb_pred, rgb_gt)
        loss = jax.block_until_ready(out["loss"])

        ref = jnp.mean((rgb_pred - rgb_gt) ** 2)
        assert jnp.allclose(loss, ref, rtol=1e-6, atol=1e-6), (shp, loss, ref)

    print("KERNEL_OK")
</pallas_src>

<mosaic_0001>
module attributes {stable_mosaic.version = 11 : i64} {
  func.func @kernel(%arg0: i32, %arg1: i32, %arg2: memref<16x128xf32, #tpu.memory_space<vmem>>, %arg3: memref<16x128xf32, #tpu.memory_space<vmem>>, %arg4: memref<1x8x128xf32, #tpu.memory_space<vmem>>) attributes {dimension_semantics = [#tpu.dimension_semantics<parallel>, #tpu.dimension_semantics<arbitrary>], iteration_bounds = array<i64: 2, 1>, scalar_prefetch = 0 : i64, scratch_operands = 0 : i64, tpu.core_type = #tpu.core_type<tc>, window_params = [{transform_indices = @transform_0, window_bounds = array<i64: 16, 128>}, {transform_indices = @transform_1, window_bounds = array<i64: 16, 128>}, {transform_indices = @transform_2, window_bounds = array<i64: 1, 8, 128>}]} {
    %c0_i32 = arith.constant 0 : i32
    %0 = arith.cmpi eq, %arg1, %c0_i32 : i32
    %1 = arith.extui %0 : i1 to i32
    %c0_i32_0 = arith.constant 0 : i32
    %2 = arith.cmpi ne, %1, %c0_i32_0 : i32
    scf.if %2 {
      %cst_12 = arith.constant 0.000000e+00 : f32
      %25 = vector.broadcast %cst_12 : f32 to vector<1x8x128xf32>
      %c0_13 = arith.constant 0 : index
      %c0_14 = arith.constant 0 : index
      %c0_15 = arith.constant 0 : index
      %26 = vector.load %arg4[%c0_13, %c0_14, %c0_15] : memref<1x8x128xf32, #tpu.memory_space<vmem>>, vector<1x8x128xf32>
      tpu.vector_store %arg4[%c0_13, %c0_14, %c0_15], %25 {strides = array<i32>} : memref<1x8x128xf32, #tpu.memory_space<vmem>>, vector<1x8x128xf32>,
    } else {
    }
    %c0 = arith.constant 0 : index
    %c0_1 = arith.constant 0 : index
    %3 = vector.load %arg2[%c0, %c0_1] : memref<16x128xf32, #tpu.memory_space<vmem>>, vector<16x128xf32>
    %c0_2 = arith.constant 0 : index
    %c0_3 = arith.constant 0 : index
    %4 = vector.load %arg3[%c0_2, %c0_3] : memref<16x128xf32, #tpu.memory_space<vmem>>, vector<16x128xf32>
    %5 = arith.subf %3, %4 : vector<16x128xf32>
    %c1_i32 = arith.constant 1 : i32
    %6 = arith.muli %arg0, %c1_i32 : i32
    %7 = arith.addi %6, %arg1 : i32
    %c16_i32 = arith.constant 16 : i32
    %8 = arith.muli %7, %c16_i32 : i32
    %9 = tpu.iota {dimensions = array<i32: 0>} : vector<16x1xi32>
    %10 = vector.broadcast %8 : i32 to vector<16x1xi32>
    %11 = arith.addi %10, %9 : vector<16x1xi32>
    %c16_i32_4 = arith.constant 16 : i32
    %12 = vector.broadcast %c16_i32_4 : i32 to vector<16x1xi32>
    %13 = arith.cmpi slt, %11, %12 : vector<16x1xi32>
    %cst = arith.constant 0.000000e+00 : f32
    %14 = vector.shape_cast %13 : vector<16x1xi1> to vector<16x1xi1>
    %15 = vector.broadcast %14 : vector<16x1xi1> to vector<16x128xi1>
    %16 = vector.broadcast %cst : f32 to vector<16x128xf32>
    %17 = arith.select %15, %5, %16 : vector<16x128xi1>, vector<16x128xf32>
    %18 = arith.mulf %17, %17 : vector<16x128xf32>
    %19 = vector.shape_cast %18 : vector<16x128xf32> to vector<2x8x128xf32>
    %cst_5 = arith.constant dense<0.000000e+00> : vector<8x128xf32>
    %20 = vector.multi_reduction <add>, %19, %cst_5 [0] : vector<2x8x128xf32> to vector<8x128xf32>
    %c0_6 = arith.constant 0 : index
    %c0_7 = arith.constant 0 : index
    %c0_8 = arith.constant 0 : index
    %21 = vector.load %arg4[%c0_6, %c0_7, %c0_8] : memref<1x8x128xf32, #tpu.memory_space<vmem>>, vector<1x8x128xf32>
    %22 = vector.shape_cast %20 : vector<8x128xf32> to vector<1x8x128xf32>
    %23 = arith.addf %21, %22 : vector<1x8x128xf32>
    %c0_9 = arith.constant 0 : index
    %c0_10 = arith.constant 0 : index
    %c0_11 = arith.constant 0 : index
    %24 = vector.load %arg4[%c0_9, %c0_10, %c0_11] : memref<1x8x128xf32, #tpu.memory_space<vmem>>, vector<1x8x128xf32>
    tpu.vector_store %arg4[%c0_9, %c0_10, %c0_11], %23 {strides = array<i32>} : memref<1x8x128xf32, #tpu.memory_space<vmem>>, vector<1x8x128xf32>,
    return
  }
  func.func @transform_0(%arg0: i32, %arg1: i32) -> (i32, i32) {
    %c1_i32 = arith.constant 1 : i32
    %0 = arith.muli %arg0, %c1_i32 : i32
    %1 = arith.addi %0, %arg1 : i32
    %c0_i32 = arith.constant 0 : i32
    %2 = arith.minsi %1, %c0_i32 : i32
    %c0_i32_0 = arith.constant 0 : i32
    %c0_i32_1 = arith.constant 0 : i32
    return %2, %c0_i32_0 : i32, i32
  }
  func.func @transform_1(%arg0: i32, %arg1: i32) -> (i32, i32) {
    %c1_i32 = arith.constant 1 : i32
    %0 = arith.muli %arg0, %c1_i32 : i32
    %1 = arith.addi %0, %arg1 : i32
    %c0_i32 = arith.constant 0 : i32
    %2 = arith.minsi %1, %c0_i32 : i32
    %c0_i32_0 = arith.constant 0 : i32
    %c0_i32_1 = arith.constant 0 : i32
    return %2, %c0_i32_0 : i32, i32
  }
  func.func @transform_2(%arg0: i32, %arg1: i32) -> (i32, i32, i32) {
    %c0_i32 = arith.constant 0 : i32
    %c0_i32_0 = arith.constant 0 : i32
    %c0_i32_1 = arith.constant 0 : i32
    return %arg0, %c0_i32, %c0_i32_0 : i32, i32, i32
  }
}

</mosaic_0001>

<bundles_post_ra>
// kernel: _lambda_.1
= control target key start
LH: loop header
LB: loop body
LE: loop exit
PB: predicated region body
PF: predicated region fallthrough
CT: control target
= control target key end

     0   :  { %s403_s9 = smov 0   ;;  %s405_s10 = smov 0   ;;  %s446_s0 = inlined_call_operand.vmem [shape: f32[16,128], index: 0, kind: input, shape index: {}]   ;;  %s447_s1 = inlined_call_operand.vmem [shape: f32[16,128], index: 1, kind: input, shape index: {}]   ;;  %s448_s2 = inlined_call_operand.vmem [shape: f32[2,8,128], index: 2, kind: output, shape index: {}]  }
   0x1   :  { %s407_s11 = smov 0  }
   0x2 LB: > { %s24_s12 = sadd.s32 1, %s382_s10  ;;  %p330_p0 = scmp.ge.s32.totalorder %s386_s11, 1  ;;  %s386_s11 = sphi %s407_s11, %s12_s11   ;;  %s382_s10 = sphi %s405_s10, %s450_s10   ;;  %s378_s9 = sphi %s403_s9, %s449_s9  }
   0x3   : > { %p26_p1 = scmp.ge.s32.totalorder %s24_s12, 2  ;;  %p160_p2 = scmp.lt.s32.totalorder %s386_s11, 3 }
   0x5   : > { %s452_s12 = smov (%p26_p1, %s24_s12), 0  ;;  %p161_p3 = pnand %p330_p0, %p160_p2 }
   0x6   : > { %p193_p4 = scmp.lt.s32.totalorder (!%p161_p3), %s378_s9, 0  ;;  %s336_s13 = sshll.u32 (!%p161_p3), %s378_s9, 4 }
   0x7   : > { %164 = sbr.rel (%p161_p3) target bundleno = 30 (0x1e), region = 28  ;;  %p216_p6 = scmp.lt.s32.totalorder (!%p161_p3), %s378_s9, 1 }
   0xc   : > { %v233_v0 = vlaneseq  ;;  %s194_s14 = scalar_select %p193_p4, %s378_s9, 0  ;;  %v236_v3 = vstv %s336_s13 }
   0xd   : > { %s456_s9 = smov (!%p216_p6, %s378_s9), 1 }
   0xe   : > { %v234_v1 = vshrl.u32 %v233_v0, 7  ;;  %s331_s15 = sshll.u32 %s194_s14, 1  ;;  %s335_s23 = sshll.u32 %s456_s9, 3 }
   0xf   : > { %p196_p5 = scmp.lt.s32.totalorder %s331_s15, 1  ;;  %s219_s26 = scalar_lea.vmem %s448_s2, %s335_s23 }
  0x10   : > { %v235_v2 = vadd.s32 8, %v234_v1  ;;  %v237_v4 = vadd.s32 %v236_v3, %v234_v1 }
  0x11   : > { %s454_s15 = smov (!%p196_p5, %s331_s15), 1 }
  0x12   : > { %v238_v5 = vadd.s32 %v236_v3, %v235_v2  ;;  %s332_s16 = sshll.u32 %s454_s15, 3  ;;  %vm239_vm0 = vcmp.lt.s32.totalorder %v237_v4, 16 }
  0x13   : > { %s199_s19 = scalar_lea.vmem %s446_s0, %s332_s16  ;;  %s211_s22 = scalar_lea.vmem %s447_s1, %s332_s16 }
  0x14   : > { %v225_v6 = vld [vmem:[%s199_s19] sm:$0xff]  ;;  %v226_v7 = vld [vmem:[%s199_s19 + $0x8] sm:$0xff]  ;;  %vm240_vm1 = vcmp.lt.s32.totalorder %v238_v5, 16 }
  0x15   : > { %v227_v8 = vld [vmem:[%s211_s22] sm:$0xff]  ;;  %v228_v9 = vld [vmem:[%s211_s22 + $0x8] sm:$0xff] }
  0x16   : > { %v229_v10 = vsub.f32 %v225_v6, %v227_v8  ;;  %v230_v11 = vsub.f32 %v226_v7, %v228_v9 }
  0x18   : > { %v245_v12 = vsel %vm239_vm0, %v229_v10, 0.0  ;;  %v246_v13 = vsel %vm240_vm1, %v230_v11, 0.0 }
  0x19   : > { %v247_v14 = vmul.f32 %v245_v12, %v245_v12  ;;  %v248_v15 = vmul.f32 %v246_v13, %v246_v13 }
  0x1b   : > { %v249_v16 = vadd.f32 %v248_v15, %v247_v14 }
  0x1d   : > { %252 = vst [vmem:[%s219_s26] sm:$0xff] %v249_v16 }
  0x1e PF: > { %s12_s11 = sadd.s32 1, %s386_s11   ;;  %s449_s9 = smov %s382_s10 }
  0x1f   : > { %p9_p7 = scmp.ge.s32.totalorder %s12_s11, 4   ;;  %s450_s10 = smov %s452_s12 }
  0x21   :  { %11 = sbr.rel (!%p9_p7) target bundleno = 2 (0x2), region = 65 }

</bundles_post_ra>
